<compile_context>
chip_gen: v7x
topology: tpu7x:2x2x1
jax: 0.10.0
libtpu: 0.0.40
codegen_flags: <defaults>
</compile_context>

<pallas_src>
import jax
import jax.numpy as jnp
from jax.experimental import pallas as pl
from jax.experimental.pallas import tpu as pltpu

_SUBLANE = 8
_BN_EPS = 1e-5


def _round_up(n, m):
    return ((n + m - 1) // m) * m


def _pick_tm(batch):
    """Largest batch tile with bounded padding waste (avoid 2x work blow-ups)."""
    for t in (1024, 512, 256, 128, 64, 32, 16):
        if t <= batch and (_round_up(batch, t) - batch) <= max(batch // 8, 64):
            return t
    return min(512, _round_up(batch, _SUBLANE))


def _const_spec(shape, single_buffer):
    """BlockSpec for a grid-invariant (VMEM-resident) parameter."""
    index_map = lambda *_: (0,) * len(shape)
    if single_buffer and hasattr(pl, "Buffered"):
        # Double-buffering a constant-index block only wastes VMEM headroom.
        return pl.BlockSpec(shape, index_map, pipeline_mode=pl.Buffered(1))
    return pl.BlockSpec(shape, index_map)


# --------------------------- pass 1: BN statistics ---------------------------
def _bn_stats_kernel(shift_ref, x_ref, sum_ref, sq_ref):
    """Accumulate per-feature sum and shifted sum-of-squares over batch tiles."""

    @pl.when(pl.program_id(1) == 0)
    def _init():
        sum_ref[...] = jnp.zeros_like(sum_ref)
        sq_ref[...] = jnp.zeros_like(sq_ref)

    x = x_ref[...].astype(jnp.float32)                       # [tm, F_in]
    d = x - shift_ref[...]                                   # shifted for stability
    sum_ref[...] += jnp.sum(x, axis=0, keepdims=True)        # [1, F_in]
    sq_ref[...] += jnp.sum(d * d, axis=0, keepdims=True)     # [1, F_in]


# --------------------------- pass 2: fused MLP body ---------------------------
def _make_mlp_kernel(n_linear):
    def kernel(x_ref, *rest):
        # rest = (w1, b1, ..., wN, bN, out_ref); weights are [in, out].
        o_ref = rest[-1]
        wb = rest[:-1]

        h = x_ref[...].astype(jnp.float32)                   # BN already folded into W1/b1
        for i in range(n_linear):
            w = wb[2 * i][...]                                # [in, out] (bf16 or f32)
            b = wb[2 * i + 1][...].astype(jnp.float32)        # [1, out] f32
            h = jnp.dot(h.astype(w.dtype), w,
                        preferred_element_type=jnp.float32) + b
            if i < n_linear - 1:
                h = jnp.maximum(h, 0.0)                       # ReLU on f32 accumulator
        o_ref[...] = h.astype(o_ref.dtype)

    return kernel


def _mlp_forward(x, gamma, beta, weights, biases, *, param_dtype, tm,
                 single_buffer_params):
    B, f_in = x.shape
    n_linear = len(weights)
    f_out = weights[-1].shape[0]

    if tm is None:
        tm = _pick_tm(B)
    n_chunks = 2 if pl.cdiv(B, tm) >= 2 else 1                # v7x: 2 TC split of pass 1
    b_pad = _round_up(B, tm * n_chunks)
    total_tiles = b_pad // tm
    tiles_per_chunk = total_tiles // n_chunks
    n_pad_rows = b_pad - B

    x_f32 = jnp.asarray(x, jnp.float32)
    x_p = jnp.pad(x_f32, ((0, n_pad_rows), (0, 0)))           # row pad only, no lane pad
    shift = x_f32[0:1, :]                                     # constant shift for variance

    gamma_f = jnp.asarray(gamma, jnp.float32).reshape(-1)
    beta_f = jnp.asarray(beta, jnp.float32).reshape(-1)

    # ---- pass 1: per-chunk partial BN sums (chunks parallel, tiles arbitrary) ----
    sum_p, sq_p = pl.pallas_call(
        _bn_stats_kernel,
        grid=(n_chunks, tiles_per_chunk),
        in_specs=[
            _const_spec((1, f_in), single_buffer_params),
            pl.BlockSpec((tm, f_in), lambda c, j: (c * tiles_per_chunk + j, 0)),
        ],
        out_specs=[
            pl.BlockSpec((1, f_in), lambda c, j: (c, 0)),
            pl.BlockSpec((1, f_in), lambda c, j: (c, 0)),
        ],
        out_shape=[
            jax.ShapeDtypeStruct((n_chunks, f_in), jnp.float32),
            jax.ShapeDtypeStruct((n_chunks, f_in), jnp.float32),
        ],
        compiler_params=pltpu.CompilerParams(
            dimension_semantics=("parallel", "arbitrary")),
    )(shift, x_p)

    # ---- combine / finalize stats (tiny [F_in] jnp ops) ----
    shift_v = shift[0]
    total_sum = jnp.sum(sum_p, axis=0)
    # zero-padded rows contribute shift^2 each to the shifted sum-of-squares
    total_sq = jnp.sum(sq_p, axis=0) - n_pad_rows * (shift_v * shift_v)
    mean = total_sum / B
    var = jnp.maximum(total_sq / B - (mean - shift_v) ** 2, 0.0)   # biased variance
    rstd = jax.lax.rsqrt(var + _BN_EPS)

    # ---- fold BN affine into the first Linear ----
    s = rstd * gamma_f                                         # [F_in]
    wt0 = jnp.asarray(weights[0], jnp.float32).T               # [in, out]
    b0 = (beta_f - mean * s) @ wt0 + jnp.asarray(biases[0], jnp.float32)
    w0 = wt0 * s[:, None]

    wb_args = [w0.astype(param_dtype), b0.reshape(1, -1).astype(jnp.float32)]
    for w, b in zip(weights[1:], biases[1:]):
        wb_args.append(jnp.asarray(w, jnp.float32).T.astype(param_dtype))
        wb_args.append(jnp.asarray(b, jnp.float32).reshape(1, -1))

    wb_specs = [_const_spec(tuple(a.shape), single_buffer_params) for a in wb_args]

    # ---- VMEM budget (explicit limit: v5e default 16 MiB, v7x physical 64 MiB) ----
    param_bytes = sum(int(a.size) * a.dtype.itemsize for a in wb_args)
    max_width = max([f_in] + [w.shape[0] for w in weights])
    est = (2 * param_bytes                              # params (<=2 buffers each)
           + 2 * tm * f_in * 4 + 2 * tm * f_out * 4     # double-buffered x / out tiles
           + 4 * tm * max_width * 4)                    # activation temps
    vmem_limit = int(min(max(4 * est, 16 << 20), 48 << 20))

    # ---- pass 2: fused normalize-free Linear/ReLU chain, batch-parallel grid ----
    out_padded = pl.pallas_call(
        _make_mlp_kernel(n_linear),
        grid=(total_tiles,),
        in_specs=[pl.BlockSpec((tm, f_in), lambda i: (i, 0))] + wb_specs,
        out_specs=pl.BlockSpec((tm, f_out), lambda i: (i, 0)),
        out_shape=jax.ShapeDtypeStruct((b_pad, f_out), x.dtype),
        compiler_params=pltpu.CompilerParams(
            dimension_semantics=("parallel",),
            vmem_limit_bytes=vmem_limit),
    )(x_p, *wb_args)

    return out_padded[:B]


def mlp_forward(x, gamma, beta, weights, biases, *, param_dtype=jnp.bfloat16,
                tm=None):
    """BatchNorm1d (training stats) -> [Linear -> ReLU]* -> Linear via Pallas.

    x:       [B, F_in] float32
    gamma:   [F_in] BN weight,  beta: [F_in] BN bias
    weights: list of [out_i, in_i] PyTorch-layout Linear weights
    biases:  list of [out_i] Linear biases
    param_dtype: dtype for the matmul operands (bf16 default; f32 for validation)
    """
    try:
        return _mlp_forward(x, gamma, beta, weights, biases,
                            param_dtype=param_dtype, tm=tm,
                            single_buffer_params=True)
    except Exception:
        # Fallback if pipeline_mode=pl.Buffered(1) is unsupported on this jax build.
        return _mlp_forward(x, gamma, beta, weights, biases,
                            param_dtype=param_dtype, tm=tm,
                            single_buffer_params=False)


def _torch_like_linear_init(key, in_features, out_features):
    """Deterministic init mimicking PyTorch nn.Linear default (U(-k, k), k=1/sqrt(in))."""
    kw, kb = jax.random.split(key)
    bound = 1.0 / jnp.sqrt(jnp.float32(in_features))
    w = jax.random.uniform(kw, (out_features, in_features), jnp.float32, -bound, bound)
    b = jax.random.uniform(kb, (out_features,), jnp.float32, -bound, bound)
    return w, b


def _reference_mlp(x, gamma, beta, weights, biases):
    """Pure-JAX reference matching the PyTorch forward (training-mode BN, dropout=0)."""
    mean = jnp.mean(x, axis=0, keepdims=True)
    var = jnp.mean((x - mean) ** 2, axis=0, keepdims=True)
    h = (x - mean) / jnp.sqrt(var + _BN_EPS) * gamma + beta
    for i, (w, b) in enumerate(zip(weights, biases)):
        h = h @ w.T + b
        if i < len(weights) - 1:
            h = jnp.maximum(h, 0.0)
    return h


if __name__ == "__main__":
    # Module config: MLP(input_size=16, hidden_sizes=[32, 32], output_size=8)
    input_size = 16
    hidden_sizes = [32, 32]
    output_size = 8
    batch = 8

    key = jax.random.PRNGKey(0)
    key, kx = jax.random.split(key)
    x = jax.random.normal(kx, (batch, input_size), jnp.float32)

    # BatchNorm1d params (PyTorch default: weight=1, bias=0).
    gamma = jnp.ones((input_size,), jnp.float32)
    beta = jnp.zeros((input_size,), jnp.float32)

    # Linear layers (deterministic, PyTorch-like init).
    sizes = [input_size] + list(hidden_sizes) + [output_size]
    weights, biases = [], []
    for i in range(len(sizes) - 1):
        key, klayer = jax.random.split(key)
        w, b = _torch_like_linear_init(klayer, sizes[i], sizes[i + 1])
        weights.append(w)
        biases.append(b)

    ref = _reference_mlp(x, gamma, beta, weights, biases)

    # f32 path: exact-semantics validation against the reference.
    out_f32 = jax.block_until_ready(
        mlp_forward(x, gamma, beta, weights, biases, param_dtype=jnp.float32))
    assert out_f32.shape == (batch, output_size)
    assert jnp.allclose(out_f32, ref, atol=1e-4, rtol=1e-4), "f32 mismatch vs reference"

    # bf16-weight path (MXU-native rate, half the param footprint): looser tolerance.
    out_bf16 = jax.block_until_ready(
        mlp_forward(x, gamma, beta, weights, biases, param_dtype=jnp.bfloat16))
    assert out_bf16.shape == (batch, output_size)
    assert jnp.allclose(out_bf16, ref, atol=5e-2, rtol=5e-2), "bf16 mismatch vs reference"

    print("KERNEL_OK")
</pallas_src>

<mosaic_0001>
module attributes {stable_mosaic.version = 11 : i64} {
  func.func @_bn_stats_kernel(%arg0: i32, %arg1: i32, %arg2: memref<1x16xf32, #tpu.memory_space<vmem>>, %arg3: memref<8x16xf32, #tpu.memory_space<vmem>>, %arg4: memref<1x16xf32, #tpu.memory_space<vmem>>, %arg5: memref<1x16xf32, #tpu.memory_space<vmem>>) attributes {dimension_semantics = [#tpu.dimension_semantics<parallel>, #tpu.dimension_semantics<arbitrary>], iteration_bounds = array<i64: 1, 1>, scalar_prefetch = 0 : i64, scratch_operands = 0 : i64, tpu.core_type = #tpu.core_type<tc>, window_params = [{pipeline_mode = #tpu.pipeline_mode<synchronous>, transform_indices = @transform_0, window_bounds = array<i64: 1, 16>}, {transform_indices = @transform_1, window_bounds = array<i64: 8, 16>}, {transform_indices = @transform_2, window_bounds = array<i64: 1, 16>}, {transform_indices = @transform_3, window_bounds = array<i64: 1, 16>}]} {
    %c0_i32 = arith.constant 0 : i32
    %0 = arith.cmpi eq, %arg1, %c0_i32 : i32
    %1 = arith.extui %0 : i1 to i32
    %c0_i32_0 = arith.constant 0 : i32
    %2 = arith.cmpi ne, %1, %c0_i32_0 : i32
    scf.if %2 {
      %cst_13 = arith.constant 0.000000e+00 : f32
      %18 = vector.broadcast %cst_13 : f32 to vector<1x16xf32>
      %c0_14 = arith.constant 0 : index
      %c0_15 = arith.constant 0 : index
      %19 = vector.load %arg4[%c0_14, %c0_15] : memref<1x16xf32, #tpu.memory_space<vmem>>, vector<1x16xf32>
      tpu.vector_store %arg4[%c0_14, %c0_15], %18 {strides = array<i32>} : memref<1x16xf32, #tpu.memory_space<vmem>>, vector<1x16xf32>,
      %cst_16 = arith.constant 0.000000e+00 : f32
      %20 = vector.broadcast %cst_16 : f32 to vector<1x16xf32>
      %c0_17 = arith.constant 0 : index
      %c0_18 = arith.constant 0 : index
      %21 = vector.load %arg5[%c0_17, %c0_18] : memref<1x16xf32, #tpu.memory_space<vmem>>, vector<1x16xf32>
      tpu.vector_store %arg5[%c0_17, %c0_18], %20 {strides = array<i32>} : memref<1x16xf32, #tpu.memory_space<vmem>>, vector<1x16xf32>,
    } else {
    }
    %c0 = arith.constant 0 : index
    %c0_1 = arith.constant 0 : index
    %3 = vector.load %arg3[%c0, %c0_1] : memref<8x16xf32, #tpu.memory_space<vmem>>, vector<8x16xf32>
    %c0_2 = arith.constant 0 : index
    %c0_3 = arith.constant 0 : index
    %4 = vector.load %arg2[%c0_2, %c0_3] : memref<1x16xf32, #tpu.memory_space<vmem>>, vector<1x16xf32>
    %5 = vector.broadcast %4 : vector<1x16xf32> to vector<8x16xf32>
    %6 = arith.subf %3, %5 : vector<8x16xf32>
    %c0_4 = arith.constant 0 : index
    %c0_5 = arith.constant 0 : index
    %7 = vector.load %arg4[%c0_4, %c0_5] : memref<1x16xf32, #tpu.memory_space<vmem>>, vector<1x16xf32>
    %cst = arith.constant dense<0.000000e+00> : vector<16xf32>
    %8 = vector.multi_reduction <add>, %3, %cst [0] : vector<8x16xf32> to vector<16xf32>
    %9 = vector.shape_cast %8 : vector<16xf32> to vector<1x16xf32>
    %10 = arith.addf %7, %9 : vector<1x16xf32>
    %c0_6 = arith.constant 0 : index
    %c0_7 = arith.constant 0 : index
    %11 = vector.load %arg4[%c0_6, %c0_7] : memref<1x16xf32, #tpu.memory_space<vmem>>, vector<1x16xf32>
    tpu.vector_store %arg4[%c0_6, %c0_7], %10 {strides = array<i32>} : memref<1x16xf32, #tpu.memory_space<vmem>>, vector<1x16xf32>,
    %c0_8 = arith.constant 0 : index
    %c0_9 = arith.constant 0 : index
    %12 = vector.load %arg5[%c0_8, %c0_9] : memref<1x16xf32, #tpu.memory_space<vmem>>, vector<1x16xf32>
    %13 = arith.mulf %6, %6 : vector<8x16xf32>
    %cst_10 = arith.constant dense<0.000000e+00> : vector<16xf32>
    %14 = vector.multi_reduction <add>, %13, %cst_10 [0] : vector<8x16xf32> to vector<16xf32>
    %15 = vector.shape_cast %14 : vector<16xf32> to vector<1x16xf32>
    %16 = arith.addf %12, %15 : vector<1x16xf32>
    %c0_11 = arith.constant 0 : index
    %c0_12 = arith.constant 0 : index
    %17 = vector.load %arg5[%c0_11, %c0_12] : memref<1x16xf32, #tpu.memory_space<vmem>>, vector<1x16xf32>
    tpu.vector_store %arg5[%c0_11, %c0_12], %16 {strides = array<i32>} : memref<1x16xf32, #tpu.memory_space<vmem>>, vector<1x16xf32>,
    return
  }
  func.func @transform_0(%arg0: i32, %arg1: i32) -> (i32, i32) {
    %c0_i32 = arith.constant 0 : i32
    %c0_i32_0 = arith.constant 0 : i32
    %c0_i32_1 = arith.constant 0 : i32
    return %c0_i32, %c0_i32_0 : i32, i32
  }
  func.func @transform_1(%arg0: i32, %arg1: i32) -> (i32, i32) {
    %c1_i32 = arith.constant 1 : i32
    %0 = arith.muli %arg0, %c1_i32 : i32
    %1 = arith.addi %0, %arg1 : i32
    %c0_i32 = arith.constant 0 : i32
    %c0_i32_0 = arith.constant 0 : i32
    return %1, %c0_i32 : i32, i32
  }
  func.func @transform_2(%arg0: i32, %arg1: i32) -> (i32, i32) {
    %c0_i32 = arith.constant 0 : i32
    %c0_i32_0 = arith.constant 0 : i32
    return %arg0, %c0_i32 : i32, i32
  }
  func.func @transform_3(%arg0: i32, %arg1: i32) -> (i32, i32) {
    %c0_i32 = arith.constant 0 : i32
    %c0_i32_0 = arith.constant 0 : i32
    return %arg0, %c0_i32 : i32, i32
  }
}

module attributes {stable_mosaic.version = 11 : i64} {
  func.func @_bn_stats_kernel(%arg0: i32, %arg1: i32, %arg2: memref<1x16xf32, #tpu.memory_space<vmem>>, %arg3: memref<8x16xf32, #tpu.memory_space<vmem>>, %arg4: memref<1x16xf32, #tpu.memory_space<vmem>>, %arg5: memref<1x16xf32, #tpu.memory_space<vmem>>) attributes {dimension_semantics = [#tpu.dimension_semantics<parallel>, #tpu.dimension_semantics<arbitrary>], iteration_bounds = array<i64: 1, 1>, scalar_prefetch = 0 : i64, scratch_operands = 0 : i64, tpu.core_type = #tpu.core_type<tc>, window_params = [{pipeline_mode = #tpu.pipeline_mode<synchronous>, transform_indices = @transform_0, window_bounds = array<i64: 1, 16>}, {transform_indices = @transform_1, window_bounds = array<i64: 8, 16>}, {transform_indices = @transform_2, window_bounds = array<i64: 1, 16>}, {transform_indices = @transform_3, window_bounds = array<i64: 1, 16>}]} {
    %c0_i32 = arith.constant 0 : i32
    %0 = arith.cmpi eq, %arg1, %c0_i32 : i32
    %1 = arith.extui %0 : i1 to i32
    %c0_i32_0 = arith.constant 0 : i32
    %2 = arith.cmpi ne, %1, %c0_i32_0 : i32
    scf.if %2 {
      %cst_13 = arith.constant 0.000000e+00 : f32
      %18 = vector.broadcast %cst_13 : f32 to vector<1x16xf32>
      %c0_14 = arith.constant 0 : index
      %c0_15 = arith.constant 0 : index
      %19 = vector.load %arg4[%c0_14, %c0_15] : memref<1x16xf32, #tpu.memory_space<vmem>>, vector<1x16xf32>
      tpu.vector_store %arg4[%c0_14, %c0_15], %18 {strides = array<i32>} : memref<1x16xf32, #tpu.memory_space<vmem>>, vector<1x16xf32>,
      %cst_16 = arith.constant 0.000000e+00 : f32
      %20 = vector.broadcast %cst_16 : f32 to vector<1x16xf32>
      %c0_17 = arith.constant 0 : index
      %c0_18 = arith.constant 0 : index
      %21 = vector.load %arg5[%c0_17, %c0_18] : memref<1x16xf32, #tpu.memory_space<vmem>>, vector<1x16xf32>
      tpu.vector_store %arg5[%c0_17, %c0_18], %20 {strides = array<i32>} : memref<1x16xf32, #tpu.memory_space<vmem>>, vector<1x16xf32>,
    } else {
    }
    %c0 = arith.constant 0 : index
    %c0_1 = arith.constant 0 : index
    %3 = vector.load %arg3[%c0, %c0_1] : memref<8x16xf32, #tpu.memory_space<vmem>>, vector<8x16xf32>
    %c0_2 = arith.constant 0 : index
    %c0_3 = arith.constant 0 : index
    %4 = vector.load %arg2[%c0_2, %c0_3] : memref<1x16xf32, #tpu.memory_space<vmem>>, vector<1x16xf32>
    %5 = vector.broadcast %4 : vector<1x16xf32> to vector<8x16xf32>
    %6 = arith.subf %3, %5 : vector<8x16xf32>
    %c0_4 = arith.constant 0 : index
    %c0_5 = arith.constant 0 : index
    %7 = vector.load %arg4[%c0_4, %c0_5] : memref<1x16xf32, #tpu.memory_space<vmem>>, vector<1x16xf32>
    %cst = arith.constant dense<0.000000e+00> : vector<16xf32>
    %8 = vector.multi_reduction <add>, %3, %cst [0] : vector<8x16xf32> to vector<16xf32>
    %9 = vector.shape_cast %8 : vector<16xf32> to vector<1x16xf32>
    %10 = arith.addf %7, %9 : vector<1x16xf32>
    %c0_6 = arith.constant 0 : index
    %c0_7 = arith.constant 0 : index
    %11 = vector.load %arg4[%c0_6, %c0_7] : memref<1x16xf32, #tpu.memory_space<vmem>>, vector<1x16xf32>
    tpu.vector_store %arg4[%c0_6, %c0_7], %10 {strides = array<i32>} : memref<1x16xf32, #tpu.memory_space<vmem>>, vector<1x16xf32>,
    %c0_8 = arith.constant 0 : index
    %c0_9 = arith.constant 0 : index
    %12 = vector.load %arg5[%c0_8, %c0_9] : memref<1x16xf32, #tpu.memory_space<vmem>>, vector<1x16xf32>
    %13 = arith.mulf %6, %6 : vector<8x16xf32>
    %cst_10 = arith.constant dense<0.000000e+00> : vector<16xf32>
    %14 = vector.multi_reduction <add>, %13, %cst_10 [0] : vector<8x16xf32> to vector<16xf32>
    %15 = vector.shape_cast %14 : vector<16xf32> to vector<1x16xf32>
    %16 = arith.addf %12, %15 : vector<1x16xf32>
    %c0_11 = arith.constant 0 : index
    %c0_12 = arith.constant 0 : index
    %17 = vector.load %arg5[%c0_11, %c0_12] : memref<1x16xf32, #tpu.memory_space<vmem>>, vector<1x16xf32>
    tpu.vector_store %arg5[%c0_11, %c0_12], %16 {strides = array<i32>} : memref<1x16xf32, #tpu.memory_space<vmem>>, vector<1x16xf32>,
    return
  }
  func.func @transform_0(%arg0: i32, %arg1: i32) -> (i32, i32) {
    %c0_i32 = arith.constant 0 : i32
    %c0_i32_0 = arith.constant 0 : i32
    %c0_i32_1 = arith.constant 0 : i32
    return %c0_i32, %c0_i32_0 : i32, i32
  }
  func.func @transform_1(%arg0: i32, %arg1: i32) -> (i32, i32) {
    %c1_i32 = arith.constant 1 : i32
    %0 = arith.muli %arg0, %c1_i32 : i32
    %1 = arith.addi %0, %arg1 : i32
    %c0_i32 = arith.constant 0 : i32
    %c0_i32_0 = arith.constant 0 : i32
    return %1, %c0_i32 : i32, i32
  }
  func.func @transform_2(%arg0: i32, %arg1: i32) -> (i32, i32) {
    %c0_i32 = arith.constant 0 : i32
    %c0_i32_0 = arith.constant 0 : i32
    return %arg0, %c0_i32 : i32, i32
  }
  func.func @transform_3(%arg0: i32, %arg1: i32) -> (i32, i32) {
    %c0_i32 = arith.constant 0 : i32
    %c0_i32_0 = arith.constant 0 : i32
    return %arg0, %c0_i32 : i32, i32
  }
}

</mosaic_0001>

<bundles_post_ra>
// kernel: tpu_custom_call.1
= control target key start
LH: loop header
LB: loop body
LE: loop exit
PB: predicated region body
PF: predicated region fallthrough
CT: control target
= control target key end

     0   :  { %9 = vsyncpa [#allocation3], 0  ;;  %s291_s0 = inlined_call_operand.hbm [shape: f32[1,16], index: 0, kind: input, shape index: {}]   ;;  %s292_s1 = inlined_call_operand.hbm [shape: f32[8,16], index: 1, kind: input, shape index: {}]   ;;  %s293_s2 = inlined_call_operand.hbm [shape: f32[1,16], index: 2, kind: output, shape index: {0}]   ;;  %s294_s3 = inlined_call_operand.hbm [shape: f32[1,16], index: 3, kind: output, shape index: {1}]  }
   0x1   :  { %10 = vsyncpa [#allocation6], 0 }
   0x2   :  { %11 = vsyncpa [#allocation4], 0 }
   0x3   :  { %12 = vsyncpa [#allocation9], 0  ;;  %s214_s12 = smov [#allocation2]   ;;  %s215_s14 = smov [#allocation5]  }
   0x4   :  { %s19_s13 = sshll.u32 %s214_s12, 4  ;;  %s32_s15 = sshll.u32 %s215_s14, 4  ;;  %s20_s13 = int_to_ptr.vmem [resolvable:$true] %s19_s13  ;;  %s33_s15 = int_to_ptr.vmem [resolvable:$true] %s32_s15 }
   0x5   :  { %s118_s18 = scalar_lea.hbm %s291_s0, 16 }
   0x6   :  { %p119_p0 = scmp.ne.s32.totalorder %s291_s0, %s118_s18  ;;  %p122_p1 = scmp.lt.u32.totalorder %s118_s18, %s291_s0 }
   0x8   :  { %p124_p2 = pnand %p122_p1, %p119_p0 }
   0xa   :  { %127 = shalt.err (!%p124_p2)
}
   0xb   :  { %s128_s23 = scalar_lea.vmem %s20_s13, 16  ;;  %s132_s24 = scalar_lea.vmem %s20_s13, 32 }
   0xc   :  { %p129_p3 = scmp.ne.s32.totalorder %s20_s13, %s128_s23  ;;  %p133_p4 = scmp.lt.s32.totalorder %s20_s13, %s20_s13 }
   0xd   :  { %p134_p5 = scmp.lt.s32.totalorder %s132_s24, %s128_s23 }
   0xf   :  { %p135_p6 = por %p134_p5, %p133_p4 }
  0x11   :  { %p136_p7 = pnand %p135_p6, %p129_p3 }
  0x13   :  { %139 = shalt.err (!%p136_p7)
}
  0x14   :  { %22 = dma.hbm_to_vmem [thread:$0]  %s291_s0, 16, %s20_s13, [#allocation3]  }
  0x15   :  { %s140_s29 = scalar_lea.hbm %s292_s1, 128 }
  0x16   :  { %p141_p8 = scmp.ne.s32.totalorder %s292_s1, %s140_s29  ;;  %p144_p9 = scmp.lt.u32.totalorder %s140_s29, %s292_s1 }
  0x18   :  { %p146_p10 = pnand %p144_p9, %p141_p8 }
  0x1a   :  { %149 = shalt.err (!%p146_p10)
}
  0x1b   :  { %s150_s7 = scalar_lea.vmem %s33_s15, 128  ;;  %p155_p12 = scmp.lt.s32.totalorder %s33_s15, %s33_s15 }
  0x1c   :  { %p151_p11 = scmp.ne.s32.totalorder %s33_s15, %s150_s7  ;;  %p156_p13 = scmp.lt.s32.totalorder %s150_s7, %s150_s7 }
  0x1e   :  { %p157_p0 = por %p156_p13, %p155_p12 }
  0x20   :  { %p158_p1 = pnand %p157_p0, %p151_p11 }
  0x22   :  { %161 = shalt.err (!%p158_p1)
}
  0x23   :  { %35 = dma.hbm_to_vmem [thread:$0]  %s292_s1, 128, %s33_s15, [#allocation6]  }
  0x24   :  { %206 = dma.done.wait [#allocation3], 16  }
  0x25   :  { %207 = vsyncadd [#allocation3], 4294967280 }
  0x26   :  { %208 = dma.done.wait [#allocation6], 128  }
  0x27   :  { %209 = vsyncadd [#allocation6], 4294967168  ;;  %vm47_vm0 = vcmask 122880   ;;  %v216_v0 = vmov 0.0   ;;  %vm60_vm1 = vcmask 130048   ;;  %v50_v1 = vld [vmem:[#allocation5] sm:$0xff] }
  0x28   :  { %48 = vst.msk [vmem:[#allocation7] sm:$0x1] %vm47_vm0, %v216_v0  ;;  %49 = vst.msk [vmem:[#allocation8] sm:$0x1] %vm47_vm0, %v216_v0  ;;  %v112_v2 = vld [vmem:[#allocation2] ss:$0 sm:$0xff] }
  0x29   :  { %v58_v3 = vsub.f32 %v50_v1, %v112_v2  ;;  %v61_v4 = vsel %vm60_vm1, %v50_v1, 0.0  ;;  %s217_s1 = smov [#allocation7]   ;;  %s218_s10 = smov [#allocation8]  }
  0x2a   :  { %v62_v5 = vrot.slane %v61_v4, 4  ;;  %s88_s9 = sshll.u32 %s217_s1, 4  ;;  %s98_s11 = sshll.u32 %s218_s10, 4  ;;  %s89_s9 = int_to_ptr.vmem [resolvable:$true] %s88_s9  ;;  %s99_s11 = int_to_ptr.vmem [resolvable:$true] %s98_s11 }
  0x2b   :  { %v72_v6 = vmul.f32 %v58_v3, %v58_v3  ;;  %s162_s12 = scalar_lea.vmem %s89_s9, 16  ;;  %s166_s13 = scalar_lea.vmem %s89_s9, 32 }
  0x2c   :  { %v63_v7 = vadd.f32 %v62_v5, %v61_v4  ;;  %p163_p2 = scmp.ne.s32.totalorder %s89_s9, %s162_s12  ;;  %p167_p3 = scmp.lt.s32.totalorder %s89_s9, %s89_s9 }
  0x2d   :  { %v73_v8 = vsel %vm60_vm1, %v72_v6, 0.0  ;;  %p168_p4 = scmp.lt.s32.totalorder %s166_s13, %s162_s12 }
  0x2e   :  { %v64_v9 = vrot.slane %v63_v7, 2  ;;  %v74_v10 = vrot.slane %v73_v8, 4 }
  0x2f   :  { %v59_v15 = vld [vmem:[#allocation7] sm:$0x1]  ;;  %v71_v20 = vld [vmem:[#allocation8] sm:$0x1]  ;;  %p169_p5 = por %p168_p4, %p167_p3 }
  0x30   :  { %v65_v11 = vadd.f32 %v64_v9, %v63_v7  ;;  %v75_v12 = vadd.f32 %v74_v10, %v73_v8 }
  0x31   :  { %p170_p6 = pnand %p169_p5, %p163_p2 }
  0x32   :  { %v66_v13 = vrot.slane %v65_v11, 1  ;;  %v76_v14 = vrot.slane %v75_v12, 2 }
  0x34   :  { %v67_v16 = vadd.f32 %v66_v13, %v65_v11  ;;  %v77_v17 = vadd.f32 %v76_v14, %v75_v12 }
  0x36   :  { %v68_v18 = vadd.f32 %v67_v16, %v59_v15  ;;  %v78_v19 = vrot.slane %v77_v17, 1 }
  0x38   :  { %70 = vst.msk [vmem:[#allocation7] sm:$0x1] %vm47_vm0, %v68_v18  ;;  %v79_v21 = vadd.f32 %v78_v19, %v77_v17 }
  0x39   :  { %173 = shalt.err (!%p170_p6)
}
  0x3a   :  { %s174_s16 = scalar_lea.hbm %s293_s2, 16 }
  0x3b   :  { %p175_p7 = scmp.ne.s32.totalorder %s293_s2, %s174_s16  ;;  %p178_p8 = scmp.lt.u32.totalorder %s174_s16, %s293_s2 }
  0x3d   :  { %p180_p9 = pnand %p178_p8, %p175_p7 }
  0x3f   :  { %183 = shalt.err (!%p180_p9)
}
  0x40   :  { %91 = dma.vmem_to_hbm [thread:$0]  %s89_s9, 16, %s293_s2, [#allocation4]   ;;  %v80_v22 = vadd.f32 %v79_v21, %v71_v20 }
  0x41   :  { %s184_s23 = scalar_lea.vmem %s99_s11, 16  ;;  %s188_s24 = scalar_lea.vmem %s99_s11, 32 }
  0x42   :  { %81 = vst.msk [vmem:[#allocation8] sm:$0x1] %vm47_vm0, %v80_v22  ;;  %p185_p10 = scmp.ne.s32.totalorder %s99_s11, %s184_s23  ;;  %p189_p11 = scmp.lt.s32.totalorder %s99_s11, %s99_s11 }
  0x43   :  { %p190_p12 = scmp.lt.s32.totalorder %s188_s24, %s184_s23 }
  0x45   :  { %p191_p13 = por %p190_p12, %p189_p11 }
  0x47   :  { %p192_p0 = pnand %p191_p13, %p185_p10 }
  0x49   :  { %195 = shalt.err (!%p192_p0)
}
  0x4a   :  { %s196_s27 = scalar_lea.hbm %s294_s3, 16 }
  0x4b   :  { %p197_p1 = scmp.ne.s32.totalorder %s294_s3, %s196_s27  ;;  %p200_p2 = scmp.lt.u32.totalorder %s196_s27, %s294_s3 }
  0x4d   :  { %p202_p3 = pnand %p200_p2, %p197_p1 }
  0x4f   :  { %205 = shalt.err (!%p202_p3)
}
  0x50   :  { %101 = dma.vmem_to_hbm [thread:$0]  %s99_s11, 16, %s294_s3, [#allocation9]  }
  0x51   :  { %210 = dma.done.wait [#allocation4], 16  }
  0x52   :  { %211 = vsyncadd [#allocation4], 4294967280 }
  0x53   :  { %212 = dma.done.wait [#allocation9], 16  }
  0x54   :  { %213 = vsyncadd [#allocation9], 4294967280 }
  0x55   :  { %108 = vsyncpa [#allocation3], 1 }
  0x56   :  { %109 = vsyncpa [#allocation6], 1 }
  0x57   :  { %110 = vsyncpa [#allocation4], 1 }
  0x58   :  { %111 = vsyncpa [#allocation9], 1 }

// kernel: tpu_custom_call.1
= control target key start
LH: loop header
LB: loop body
LE: loop exit
PB: predicated region body
PF: predicated region fallthrough
CT: control target
= control target key end

     0   :  { %9 = vsyncpa [#allocation3], 0  ;;  %s291_s0 = inlined_call_operand.hbm [shape: f32[1,16], index: 0, kind: input, shape index: {}]   ;;  %s292_s1 = inlined_call_operand.hbm [shape: f32[8,16], index: 1, kind: input, shape index: {}]   ;;  %s293_s2 = inlined_call_operand.hbm [shape: f32[1,16], index: 2, kind: output, shape index: {0}]   ;;  %s294_s3 = inlined_call_operand.hbm [shape: f32[1,16], index: 3, kind: output, shape index: {1}]  }
   0x1   :  { %10 = vsyncpa [#allocation6], 0 }
   0x2   :  { %11 = vsyncpa [#allocation4], 0 }
   0x3   :  { %12 = vsyncpa [#allocation9], 0  ;;  %s214_s12 = smov [#allocation2]   ;;  %s215_s14 = smov [#allocation5]  }
   0x4   :  { %s19_s13 = sshll.u32 %s214_s12, 4  ;;  %s32_s15 = sshll.u32 %s215_s14, 4  ;;  %s20_s13 = int_to_ptr.vmem [resolvable:$true] %s19_s13  ;;  %s33_s15 = int_to_ptr.vmem [resolvable:$true] %s32_s15 }
   0x5   :  { %s118_s18 = scalar_lea.hbm %s291_s0, 16 }
   0x6   :  { %p119_p0 = scmp.ne.s32.totalorder %s291_s0, %s118_s18  ;;  %p122_p1 = scmp.lt.u32.totalorder %s118_s18, %s291_s0 }
   0x8   :  { %p124_p2 = pnand %p122_p1, %p119_p0 }
   0xa   :  { %127 = shalt.err (!%p124_p2)
}
   0xb   :  { %s128_s23 = scalar_lea.vmem %s20_s13, 16  ;;  %s132_s24 = scalar_lea.vmem %s20_s13, 32 }
   0xc   :  { %p129_p3 = scmp.ne.s32.totalorder %s20_s13, %s128_s23  ;;  %p133_p4 = scmp.lt.s32.totalorder %s20_s13, %s20_s13 }
   0xd   :  { %p134_p5 = scmp.lt.s32.totalorder %s132_s24, %s128_s23 }
   0xf   :  { %p135_p6 = por %p134_p5, %p133_p4 }
  0x11   :  { %p136_p7 = pnand %p135_p6, %p129_p3 }
  0x13   :  { %139 = shalt.err (!%p136_p7)
}
  0x14   :  { %22 = dma.hbm_to_vmem [thread:$0]  %s291_s0, 16, %s20_s13, [#allocation3]  }
  0x15   :  { %s140_s29 = scalar_lea.hbm %s292_s1, 128 }
  0x16   :  { %p141_p8 = scmp.ne.s32.totalorder %s292_s1, %s140_s29  ;;  %p144_p9 = scmp.lt.u32.totalorder %s140_s29, %s292_s1 }
  0x18   :  { %p146_p10 = pnand %p144_p9, %p141_p8 }
  0x1a   :  { %149 = shalt.err (!%p146_p10)
}
  0x1b   :  { %s150_s7 = scalar_lea.vmem %s33_s15, 128  ;;  %p155_p12 = scmp.lt.s32.totalorder %s33_s15, %s33_s15 }
  0x1c   :  { %p151_p11 = scmp.ne.s32.totalorder %s33_s15, %s150_s7  ;;  %p156_p13 = scmp.lt.s32.totalorder %s150_s7, %s150_s7 }
  0x1e   :  { %p157_p0 = por %p156_p13, %p155_p12 }
  0x20   :  { %p158_p1 = pnand %p157_p0, %p151_p11 }
  0x22   :  { %161 = shalt.err (!%p158_p1)
}
  0x23   :  { %35 = dma.hbm_to_vmem [thread:$0]  %s292_s1, 128, %s33_s15, [#allocation6]  }
  0x24   :  { %206 = dma.done.wait [#allocation3], 16  }
  0x25   :  { %207 = vsyncadd [#allocation3], 4294967280 }
  0x26   :  { %208 = dma.done.wait [#allocation6], 128  }
  0x27   :  { %209 = vsyncadd [#allocation6], 4294967168  ;;  %vm47_vm0 = vcmask 122880   ;;  %v216_v0 = vmov 0.0   ;;  %vm60_vm1 = vcmask 130048   ;;  %v50_v1 = vld [vmem:[#allocation5] sm:$0xff] }
  0x28   :  { %48 = vst.msk [vmem:[#allocation7] sm:$0x1] %vm47_vm0, %v216_v0  ;;  %49 = vst.msk [vmem:[#allocation8] sm:$0x1] %vm47_vm0, %v216_v0  ;;  %v112_v2 = vld [vmem:[#allocation2] ss:$0 sm:$0xff] }
  0x29   :  { %v58_v3 = vsub.f32 %v50_v1, %v112_v2  ;;  %v61_v4 = vsel %vm60_vm1, %v50_v1, 0.0  ;;  %s217_s1 = smov [#allocation7]   ;;  %s218_s10 = smov [#allocation8]  }
  0x2a   :  { %v62_v5 = vrot.slane %v61_v4, 4  ;;  %s88_s9 = sshll.u32 %s217_s1, 4  ;;  %s98_s11 = sshll.u32 %s218_s10, 4  ;;  %s89_s9 = int_to_ptr.vmem [resolvable:$true] %s88_s9  ;;  %s99_s11 = int_to_ptr.vmem [resolvable:$true] %s98_s11 }
  0x2b   :  { %v72_v6 = vmul.f32 %v58_v3, %v58_v3  ;;  %s162_s12 = scalar_lea.vmem %s89_s9, 16  ;;  %s166_s13 = scalar_lea.vmem %s89_s9, 32 }
  0x2c   :  { %v63_v7 = vadd.f32 %v62_v5, %v61_v4  ;;  %p163_p2 = scmp.ne.s32.totalorder %s89_s9, %s162_s12  ;;  %p167_p3 = scmp.lt.s32.totalorder %s89_s9, %s89_s9 }
  0x2d   :  { %v73_v8 = vsel %vm60_vm1, %v72_v6, 0.0  ;;  %p168_p4 = scmp.lt.s32.totalorder %s166_s13, %s162_s12 }
  0x2e   :  { %v64_v9 = vrot.slane %v63_v7, 2  ;;  %v74_v10 = vrot.slane %v73_v8, 4 }
  0x2f   :  { %v59_v15 = vld [vmem:[#allocation7] sm:$0x1]  ;;  %v71_v20 = vld [vmem:[#allocation8] sm:$0x1]  ;;  %p169_p5 = por %p168_p4, %p167_p3 }
  0x30   :  { %v65_v11 = vadd.f32 %v64_v9, %v63_v7  ;;  %v75_v12 = vadd.f32 %v74_v10, %v73_v8 }
  0x31   :  { %p170_p6 = pnand %p169_p5, %p163_p2 }
  0x32   :  { %v66_v13 = vrot.slane %v65_v11, 1  ;;  %v76_v14 = vrot.slane %v75_v12, 2 }
  0x34   :  { %v67_v16 = vadd.f32 %v66_v13, %v65_v11  ;;  %v77_v17 = vadd.f32 %v76_v14, %v75_v12 }
  0x36   :  { %v68_v18 = vadd.f32 %v67_v16, %v59_v15  ;;  %v78_v19 = vrot.slane %v77_v17, 1 }
  0x38   :  { %70 = vst.msk [vmem:[#allocation7] sm:$0x1] %vm47_vm0, %v68_v18  ;;  %v79_v21 = vadd.f32 %v78_v19, %v77_v17 }
  0x39   :  { %173 = shalt.err (!%p170_p6)
}
  0x3a   :  { %s174_s16 = scalar_lea.hbm %s293_s2, 16 }
  0x3b   :  { %p175_p7 = scmp.ne.s32.totalorder %s293_s2, %s174_s16  ;;  %p178_p8 = scmp.lt.u32.totalorder %s174_s16, %s293_s2 }
  0x3d   :  { %p180_p9 = pnand %p178_p8, %p175_p7 }
  0x3f   :  { %183 = shalt.err (!%p180_p9)
}
  0x40   :  { %91 = dma.vmem_to_hbm [thread:$0]  %s89_s9, 16, %s293_s2, [#allocation4]   ;;  %v80_v22 = vadd.f32 %v79_v21, %v71_v20 }
  0x41   :  { %s184_s23 = scalar_lea.vmem %s99_s11, 16  ;;  %s188_s24 = scalar_lea.vmem %s99_s11, 32 }
  0x42   :  { %81 = vst.msk [vmem:[#allocation8] sm:$0x1] %vm47_vm0, %v80_v22  ;;  %p185_p10 = scmp.ne.s32.totalorder %s99_s11, %s184_s23  ;;  %p189_p11 = scmp.lt.s32.totalorder %s99_s11, %s99_s11 }
  0x43   :  { %p190_p12 = scmp.lt.s32.totalorder %s188_s24, %s184_s23 }
  0x45   :  { %p191_p13 = por %p190_p12, %p189_p11 }
  0x47   :  { %p192_p0 = pnand %p191_p13, %p185_p10 }
  0x49   :  { %195 = shalt.err (!%p192_p0)
}
  0x4a   :  { %s196_s27 = scalar_lea.hbm %s294_s3, 16 }
  0x4b   :  { %p197_p1 = scmp.ne.s32.totalorder %s294_s3, %s196_s27  ;;  %p200_p2 = scmp.lt.u32.totalorder %s196_s27, %s294_s3 }
  0x4d   :  { %p202_p3 = pnand %p200_p2, %p197_p1 }
  0x4f   :  { %205 = shalt.err (!%p202_p3)
}
  0x50   :  { %101 = dma.vmem_to_hbm [thread:$0]  %s99_s11, 16, %s294_s3, [#allocation9]  }
  0x51   :  { %210 = dma.done.wait [#allocation4], 16  }
  0x52   :  { %211 = vsyncadd [#allocation4], 4294967280 }
  0x53   :  { %212 = dma.done.wait [#allocation9], 16  }
  0x54   :  { %213 = vsyncadd [#allocation9], 4294967280 }
  0x55   :  { %108 = vsyncpa [#allocation3], 1 }
  0x56   :  { %109 = vsyncpa [#allocation6], 1 }
  0x57   :  { %110 = vsyncpa [#allocation4], 1 }
  0x58   :  { %111 = vsyncpa [#allocation9], 1 }

</bundles_post_ra>
